<compile_context>
chip_gen: v6e
topology: v6e:2x2x1
jax: 0.10.0
libtpu: 0.0.40
codegen_flags: <defaults>
</compile_context>

<pallas_src>
import jax
import jax.numpy as jnp
import numpy as np
from jax.experimental import pallas as pl
from jax.experimental.pallas import tpu as pltpu


# ---------------------------------------------------------------------------
# Pallas kernel factory: full Bottleneck forward for one batch element,
# channels-major (C, H*W) layout.
# ---------------------------------------------------------------------------
def make_kernel(H, W, C_):
    HW = H * W
    taps = [(dy, dx) for dy in (-1, 0, 1) for dx in (-1, 0, 1)]

    def kernel(x_ref, w1_ref, b1_ref, w2_ref, b2_ref, ml_ref, mr_ref,
               o_ref, p_ref):
        # x: (C1, H*W) lane-dense slab for this batch element
        x = x_ref[...].astype(jnp.float32)

        # ---- cv1: 1x1 conv (BN1 scale folded into w1) + bias + SiLU --------
        y1 = jnp.dot(w1_ref[...], x, preferred_element_type=jnp.float32)
        y1 = y1 + b1_ref[...]                       # (C_, 1) bias, lane bcast
        y1 = y1 * jax.nn.sigmoid(y1)                # SiLU, (C_, HW) lane-dense

        ml = ml_ref[...]                            # (1, HW): 0 where w == 0
        mr = mr_ref[...]                            # (1, HW): 0 where w == W-1

        # ---- im2col: 9 spatially shifted copies of y1 into scratch ---------
        # shifted_t[c, h*W + w] = y1[c, h+dy, w+dx]  (zero outside the image)
        for t, (dy, dx) in enumerate(taps):
            s = dy * W + dx
            if s > 0:
                sh = jnp.concatenate(
                    [y1[:, s:], jnp.zeros((C_, s), jnp.float32)], axis=1)
            elif s < 0:
                sh = jnp.concatenate(
                    [jnp.zeros((C_, -s), jnp.float32), y1[:, :s]], axis=1)
            else:
                sh = y1
            if dx == 1:
                sh = sh * mr                        # right-edge columns -> 0
            elif dx == -1:
                sh = sh * ml                        # left-edge columns  -> 0
            p_ref[t * C_:(t + 1) * C_, :] = sh

        # ---- cv2: 3x3 conv as ONE fat matmul (BN2 scale folded) ------------
        y2 = jnp.dot(w2_ref[...], p_ref[...],       # (C2, 9*C_) @ (9*C_, HW)
                     preferred_element_type=jnp.float32)
        y2 = y2 + b2_ref[...]
        y2 = y2 * jax.nn.sigmoid(y2)                # SiLU, (C2, HW)

        # ---- residual add (shortcut=True, c1 == c2) -------------------------
        o_ref[...] = (y2 + x).astype(o_ref.dtype)

    return kernel


# ---------------------------------------------------------------------------
# Wrapper: NCHW in / NCHW out.  No transposes: NCHW reshapes contiguously to
# (N, C, H*W), which is exactly the channels-major layout the kernel wants.
# ---------------------------------------------------------------------------
def bottleneck_forward(x_nchw, w1, b1, w2, b2):
    N, C1, H, W = x_nchw.shape
    HW = H * W
    C_ = w1.shape[0]
    C2 = w2.shape[0]

    x = x_nchw.reshape(N, C1, HW)                   # contiguous, free

    # Edge masks for the dx = +/-1 taps (precomputed outside the kernel).
    col = jnp.arange(HW, dtype=jnp.int32) % W
    mask_l = (col != 0).astype(jnp.float32).reshape(1, HW)
    mask_r = (col != W - 1).astype(jnp.float32).reshape(1, HW)

    out = pl.pallas_call(
        make_kernel(H, W, C_),
        out_shape=jax.ShapeDtypeStruct((N, C2, HW), x_nchw.dtype),
        grid_spec=pltpu.PrefetchScalarGridSpec(
            num_scalar_prefetch=0,
            grid=(N,),
            in_specs=[
                pl.BlockSpec((None, C1, HW), lambda n: (n, 0, 0)),  # x
                pl.BlockSpec((C_, C1), lambda n: (0, 0)),           # w1 folded
                pl.BlockSpec((C_, 1), lambda n: (0, 0)),            # b1
                pl.BlockSpec((C2, 9 * C_), lambda n: (0, 0)),       # w2 im2col
                pl.BlockSpec((C2, 1), lambda n: (0, 0)),            # b2
                pl.BlockSpec((1, HW), lambda n: (0, 0)),            # mask_l
                pl.BlockSpec((1, HW), lambda n: (0, 0)),            # mask_r
            ],
            out_specs=pl.BlockSpec((None, C2, HW), lambda n: (n, 0, 0)),
            scratch_shapes=[pltpu.VMEM((9 * C_, HW), jnp.float32)],
        ),
        compiler_params=pltpu.CompilerParams(
            dimension_semantics=("parallel",),       # batch -> both v7x TCs
            vmem_limit_bytes=32 * 1024 * 1024),
    )(x, w1, b1, w2, b2, mask_l, mask_r)

    return out.reshape(N, C2, H, W)                  # contiguous, free


# ---------------------------------------------------------------------------
# Deterministic parameter construction (matches nn.Module shapes) + BN folding
# (eval semantics, eps=1e-3).  BN *scale* is folded into the conv weights,
# only the bias is applied in-kernel.
# ---------------------------------------------------------------------------
def make_params(key, c1, c2, e=0.5):
    c_ = int(c2 * e)
    eps = 1e-3
    ks = jax.random.split(key, 10)

    # cv1: Conv2d(c1, c_, 1, bias=False) -> weight (c_, c1, 1, 1)
    w1_oihw = jax.random.normal(ks[0], (c_, c1, 1, 1), jnp.float32) * 0.1
    g1 = 1.0 + 0.1 * jax.random.normal(ks[1], (c_,), jnp.float32)
    beta1 = 0.1 * jax.random.normal(ks[2], (c_,), jnp.float32)
    mean1 = 0.1 * jax.random.normal(ks[3], (c_,), jnp.float32)
    var1 = jnp.abs(jax.random.normal(ks[4], (c_,), jnp.float32)) + 0.5

    # cv2: Conv2d(c_, c2, 3, pad=1, bias=False) -> weight (c2, c_, 3, 3)
    w2_oihw = jax.random.normal(ks[5], (c2, c_, 3, 3), jnp.float32) * 0.1
    g2 = 1.0 + 0.1 * jax.random.normal(ks[6], (c2,), jnp.float32)
    beta2 = 0.1 * jax.random.normal(ks[7], (c2,), jnp.float32)
    mean2 = 0.1 * jax.random.normal(ks[8], (c2,), jnp.float32)
    var2 = jnp.abs(jax.random.normal(ks[9], (c2,), jnp.float32)) + 0.5

    # BN fold: scale = g / sqrt(var+eps); bias = beta - mean*scale
    s1 = g1 / jnp.sqrt(var1 + eps)
    b1 = beta1 - mean1 * s1
    s2 = g2 / jnp.sqrt(var2 + eps)
    b2 = beta2 - mean2 * s2

    # Kernel-layout weights (channels-major, BN scale folded in):
    #   w1_k[c_, c1]            = s1[c_] * w1[c_, c1, 0, 0]
    #   w2_k[o, (ky*3+kx)*c_+c] = s2[o]  * w2[o, c, ky, kx]
    w1_k = s1[:, None] * w1_oihw[:, :, 0, 0]                              # (c_, c1)
    w2_im2col = jnp.transpose(w2_oihw, (0, 2, 3, 1)).reshape(c2, 9 * c_)  # (c2, 9*c_)
    w2_k = s2[:, None] * w2_im2col

    kernel_params = (w1_k, b1.reshape(c_, 1), w2_k, b2.reshape(c2, 1))
    torch_params = (w1_oihw, (g1, beta1, mean1, var1),
                    w2_oihw, (g2, beta2, mean2, var2))
    return kernel_params, torch_params


# ---------------------------------------------------------------------------
# Pure-JAX reference (mirrors the PyTorch forward exactly) for verification
# ---------------------------------------------------------------------------
def reference_forward(x_nchw, torch_params):
    w1, bn1, w2, bn2 = torch_params
    eps = 1e-3

    def conv_bn_silu(x, w, bn, pad):
        y = jax.lax.conv_general_dilated(
            x, w, window_strides=(1, 1),
            padding=[(pad, pad), (pad, pad)],
            dimension_numbers=('NCHW', 'OIHW', 'NCHW'))
        g, beta, mean, var = bn
        y = (y - mean[None, :, None, None]) / jnp.sqrt(
            var[None, :, None, None] + eps)
        y = y * g[None, :, None, None] + beta[None, :, None, None]
        return y * jax.nn.sigmoid(y)

    y = conv_bn_silu(x_nchw, w1, bn1, 0)
    y = conv_bn_silu(y, w2, bn2, 1)
    return x_nchw + y                                # shortcut, c1 == c2


if __name__ == "__main__":
    key = jax.random.PRNGKey(0)
    k_x, k_p = jax.random.split(key)

    # Bottleneck(c1=8, c2=8, shortcut=True, g=1, e=0.5) -> c_ = 4
    N, C1, H, W = 2, 8, 16, 16
    C2 = 8

    x = jax.random.normal(k_x, (N, C1, H, W), jnp.float32)
    kernel_params, torch_params = make_params(k_p, C1, C2)

    out = jax.block_until_ready(bottleneck_forward(x, *kernel_params))
    ref = jax.block_until_ready(reference_forward(x, torch_params))

    assert out.shape == (N, C2, H, W)
    np.testing.assert_allclose(np.asarray(out), np.asarray(ref),
                               rtol=1e-4, atol=1e-4)

    print("KERNEL_OK")
</pallas_src>

<mosaic_0001>
module attributes {stable_mosaic.version = 11 : i64} {
  func.func @kernel(%arg0: i32, %arg1: memref<1x8x256xf32, #tpu.memory_space<vmem>>, %arg2: memref<4x8xf32, #tpu.memory_space<vmem>>, %arg3: memref<4x1xf32, #tpu.memory_space<vmem>>, %arg4: memref<8x36xf32, #tpu.memory_space<vmem>>, %arg5: memref<8x1xf32, #tpu.memory_space<vmem>>, %arg6: memref<1x256xf32, #tpu.memory_space<vmem>>, %arg7: memref<1x256xf32, #tpu.memory_space<vmem>>, %arg8: memref<1x8x256xf32, #tpu.memory_space<vmem>>, %arg9: memref<36x256xf32, #tpu.memory_space<vmem>>) attributes {dimension_semantics = [#tpu.dimension_semantics<parallel>], iteration_bounds = array<i64: 2>, scalar_prefetch = 0 : i64, scratch_operands = 1 : i64, tpu.core_type = #tpu.core_type<tc>, window_params = [{transform_indices = @transform_0, window_bounds = array<i64: 1, 8, 256>}, {pipeline_mode = #tpu.pipeline_mode<synchronous>, transform_indices = @transform_1, window_bounds = array<i64: 4, 8>}, {pipeline_mode = #tpu.pipeline_mode<synchronous>, transform_indices = @transform_2, window_bounds = array<i64: 4, 1>}, {pipeline_mode = #tpu.pipeline_mode<synchronous>, transform_indices = @transform_3, window_bounds = array<i64: 8, 36>}, {pipeline_mode = #tpu.pipeline_mode<synchronous>, transform_indices = @transform_4, window_bounds = array<i64: 8, 1>}, {pipeline_mode = #tpu.pipeline_mode<synchronous>, transform_indices = @transform_5, window_bounds = array<i64: 1, 256>}, {pipeline_mode = #tpu.pipeline_mode<synchronous>, transform_indices = @transform_6, window_bounds = array<i64: 1, 256>}, {transform_indices = @transform_7, window_bounds = array<i64: 1, 8, 256>}]} {
    %c0 = arith.constant 0 : index
    %c0_0 = arith.constant 0 : index
    %c0_1 = arith.constant 0 : index
    %0 = vector.load %arg1[%c0, %c0_0, %c0_1] : memref<1x8x256xf32, #tpu.memory_space<vmem>>, vector<1x8x256xf32>
    %1 = vector.shape_cast %0 : vector<1x8x256xf32> to vector<8x256xf32>
    %c0_2 = arith.constant 0 : index
    %c0_3 = arith.constant 0 : index
    %2 = vector.load %arg2[%c0_2, %c0_3] : memref<4x8xf32, #tpu.memory_space<vmem>>, vector<4x8xf32>
    %cst = arith.constant dense<0.000000e+00> : vector<4x256xf32>
    %3 = tpu.matmul %2, %1, %cst {dimension_numbers = #tpu.dot_dimension_numbers<[1], [0], [0], [1], [0, 0, 1, 1], [], []>} : vector<4x8xf32>, vector<8x256xf32>, vector<4x256xf32> -> vector<4x256xf32>
    %c0_4 = arith.constant 0 : index
    %c0_5 = arith.constant 0 : index
    %4 = vector.load %arg3[%c0_4, %c0_5] : memref<4x1xf32, #tpu.memory_space<vmem>>, vector<4x1xf32>
    %5 = vector.broadcast %4 : vector<4x1xf32> to vector<4x256xf32>
    %6 = arith.addf %3, %5 : vector<4x256xf32>
    %7 = arith.negf %6 : vector<4x256xf32>
    %8 = math.exp %7 : vector<4x256xf32>
    %cst_6 = arith.constant 1.000000e+00 : f32
    %9 = vector.broadcast %cst_6 : f32 to vector<4x256xf32>
    %10 = arith.addf %9, %8 : vector<4x256xf32>
    %11 = arith.divf %9, %10 : vector<4x256xf32>
    %12 = arith.mulf %6, %11 : vector<4x256xf32>
    %c0_7 = arith.constant 0 : index
    %c0_8 = arith.constant 0 : index
    %13 = vector.load %arg6[%c0_7, %c0_8] : memref<1x256xf32, #tpu.memory_space<vmem>>, vector<1x256xf32>
    %c0_9 = arith.constant 0 : index
    %c0_10 = arith.constant 0 : index
    %14 = vector.load %arg7[%c0_9, %c0_10] : memref<1x256xf32, #tpu.memory_space<vmem>>, vector<1x256xf32>
    %cst_11 = arith.constant 0.000000e+00 : f32
    %15 = vector.broadcast %cst_11 : f32 to vector<4x17xf32>
    %16 = vector.extract_strided_slice %12 {offsets = [0, 0], sizes = [4, 239], strides = [1, 1]} : vector<4x256xf32> to vector<4x239xf32>
    %17 = tpu.concatenate %15, %16 in 1 : vector<4x17xf32>, vector<4x239xf32> -> vector<4x256xf32>
    %18 = vector.broadcast %13 : vector<1x256xf32> to vector<4x256xf32>
    %19 = arith.mulf %17, %18 : vector<4x256xf32>
    %c0_12 = arith.constant 0 : index
    %c0_13 = arith.constant 0 : index
    %20 = vector.load %arg9[%c0_12, %c0_13] : memref<36x256xf32, #tpu.memory_space<vmem>>, vector<4x256xf32>
    tpu.vector_store %arg9[%c0_12, %c0_13], %19 {strides = array<i32>} : memref<36x256xf32, #tpu.memory_space<vmem>>, vector<4x256xf32>,
    %cst_14 = arith.constant 0.000000e+00 : f32
    %21 = vector.broadcast %cst_14 : f32 to vector<4x16xf32>
    %22 = vector.extract_strided_slice %12 {offsets = [0, 0], sizes = [4, 240], strides = [1, 1]} : vector<4x256xf32> to vector<4x240xf32>
    %23 = tpu.concatenate %21, %22 in 1 : vector<4x16xf32>, vector<4x240xf32> -> vector<4x256xf32>
    %c4 = arith.constant 4 : index
    %c0_15 = arith.constant 0 : index
    %24 = vector.load %arg9[%c4, %c0_15] : memref<36x256xf32, #tpu.memory_space<vmem>>, vector<4x256xf32>
    tpu.vector_store %arg9[%c4, %c0_15], %23 {strides = array<i32>} : memref<36x256xf32, #tpu.memory_space<vmem>>, vector<4x256xf32>,
    %cst_16 = arith.constant 0.000000e+00 : f32
    %25 = vector.broadcast %cst_16 : f32 to vector<4x15xf32>
    %26 = vector.extract_strided_slice %12 {offsets = [0, 0], sizes = [4, 241], strides = [1, 1]} : vector<4x256xf32> to vector<4x241xf32>
    %27 = tpu.concatenate %25, %26 in 1 : vector<4x15xf32>, vector<4x241xf32> -> vector<4x256xf32>
    %28 = vector.broadcast %14 : vector<1x256xf32> to vector<4x256xf32>
    %29 = arith.mulf %27, %28 : vector<4x256xf32>
    %c8 = arith.constant 8 : index
    %c0_17 = arith.constant 0 : index
    %30 = vector.load %arg9[%c8, %c0_17] : memref<36x256xf32, #tpu.memory_space<vmem>>, vector<4x256xf32>
    tpu.vector_store %arg9[%c8, %c0_17], %29 {strides = array<i32>} : memref<36x256xf32, #tpu.memory_space<vmem>>, vector<4x256xf32>,
    %cst_18 = arith.constant 0.000000e+00 : f32
    %31 = vector.broadcast %cst_18 : f32 to vector<4x1xf32>
    %32 = vector.extract_strided_slice %12 {offsets = [0, 0], sizes = [4, 255], strides = [1, 1]} : vector<4x256xf32> to vector<4x255xf32>
    %33 = tpu.concatenate %31, %32 in 1 : vector<4x1xf32>, vector<4x255xf32> -> vector<4x256xf32>
    %34 = vector.broadcast %13 : vector<1x256xf32> to vector<4x256xf32>
    %35 = arith.mulf %33, %34 : vector<4x256xf32>
    %c12 = arith.constant 12 : index
    %c0_19 = arith.constant 0 : index
    %36 = vector.load %arg9[%c12, %c0_19] : memref<36x256xf32, #tpu.memory_space<vmem>>, vector<4x256xf32>
    tpu.vector_store %arg9[%c12, %c0_19], %35 {strides = array<i32>} : memref<36x256xf32, #tpu.memory_space<vmem>>, vector<4x256xf32>,
    %c16 = arith.constant 16 : index
    %c0_20 = arith.constant 0 : index
    %37 = vector.load %arg9[%c16, %c0_20] : memref<36x256xf32, #tpu.memory_space<vmem>>, vector<4x256xf32>
    tpu.vector_store %arg9[%c16, %c0_20], %12 {strides = array<i32>} : memref<36x256xf32, #tpu.memory_space<vmem>>, vector<4x256xf32>,
    %38 = vector.extract_strided_slice %12 {offsets = [0, 1], sizes = [4, 255], strides = [1, 1]} : vector<4x256xf32> to vector<4x255xf32>
    %cst_21 = arith.constant 0.000000e+00 : f32
    %39 = vector.broadcast %cst_21 : f32 to vector<4x1xf32>
    %40 = tpu.concatenate %38, %39 in 1 : vector<4x255xf32>, vector<4x1xf32> -> vector<4x256xf32>
    %41 = vector.broadcast %14 : vector<1x256xf32> to vector<4x256xf32>
    %42 = arith.mulf %40, %41 : vector<4x256xf32>
    %c20 = arith.constant 20 : index
    %c0_22 = arith.constant 0 : index
    %43 = vector.load %arg9[%c20, %c0_22] : memref<36x256xf32, #tpu.memory_space<vmem>>, vector<4x256xf32>
    tpu.vector_store %arg9[%c20, %c0_22], %42 {strides = array<i32>} : memref<36x256xf32, #tpu.memory_space<vmem>>, vector<4x256xf32>,
    %44 = vector.extract_strided_slice %12 {offsets = [0, 15], sizes = [4, 241], strides = [1, 1]} : vector<4x256xf32> to vector<4x241xf32>
    %cst_23 = arith.constant 0.000000e+00 : f32
    %45 = vector.broadcast %cst_23 : f32 to vector<4x15xf32>
    %46 = tpu.concatenate %44, %45 in 1 : vector<4x241xf32>, vector<4x15xf32> -> vector<4x256xf32>
    %47 = vector.broadcast %13 : vector<1x256xf32> to vector<4x256xf32>
    %48 = arith.mulf %46, %47 : vector<4x256xf32>
    %c24 = arith.constant 24 : index
    %c0_24 = arith.constant 0 : index
    %49 = vector.load %arg9[%c24, %c0_24] : memref<36x256xf32, #tpu.memory_space<vmem>>, vector<4x256xf32>
    tpu.vector_store %arg9[%c24, %c0_24], %48 {strides = array<i32>} : memref<36x256xf32, #tpu.memory_space<vmem>>, vector<4x256xf32>,
    %50 = vector.extract_strided_slice %12 {offsets = [0, 16], sizes = [4, 240], strides = [1, 1]} : vector<4x256xf32> to vector<4x240xf32>
    %cst_25 = arith.constant 0.000000e+00 : f32
    %51 = vector.broadcast %cst_25 : f32 to vector<4x16xf32>
    %52 = tpu.concatenate %50, %51 in 1 : vector<4x240xf32>, vector<4x16xf32> -> vector<4x256xf32>
    %c28 = arith.constant 28 : index
    %c0_26 = arith.constant 0 : index
    %53 = vector.load %arg9[%c28, %c0_26] : memref<36x256xf32, #tpu.memory_space<vmem>>, vector<4x256xf32>
    tpu.vector_store %arg9[%c28, %c0_26], %52 {strides = array<i32>} : memref<36x256xf32, #tpu.memory_space<vmem>>, vector<4x256xf32>,
    %54 = vector.extract_strided_slice %12 {offsets = [0, 17], sizes = [4, 239], strides = [1, 1]} : vector<4x256xf32> to vector<4x239xf32>
    %cst_27 = arith.constant 0.000000e+00 : f32
    %55 = vector.broadcast %cst_27 : f32 to vector<4x17xf32>
    %56 = tpu.concatenate %54, %55 in 1 : vector<4x239xf32>, vector<4x17xf32> -> vector<4x256xf32>
    %57 = vector.broadcast %14 : vector<1x256xf32> to vector<4x256xf32>
    %58 = arith.mulf %56, %57 : vector<4x256xf32>
    %c32 = arith.constant 32 : index
    %c0_28 = arith.constant 0 : index
    %59 = vector.load %arg9[%c32, %c0_28] : memref<36x256xf32, #tpu.memory_space<vmem>>, vector<4x256xf32>
    tpu.vector_store %arg9[%c32, %c0_28], %58 {strides = array<i32>} : memref<36x256xf32, #tpu.memory_space<vmem>>, vector<4x256xf32>,
    %c0_29 = arith.constant 0 : index
    %c0_30 = arith.constant 0 : index
    %60 = vector.load %arg4[%c0_29, %c0_30] : memref<8x36xf32, #tpu.memory_space<vmem>>, vector<8x36xf32>
    %c0_31 = arith.constant 0 : index
    %c0_32 = arith.constant 0 : index
    %61 = vector.load %arg9[%c0_31, %c0_32] : memref<36x256xf32, #tpu.memory_space<vmem>>, vector<36x256xf32>
    %cst_33 = arith.constant dense<0.000000e+00> : vector<8x256xf32>
    %62 = tpu.matmul %60, %61, %cst_33 {dimension_numbers = #tpu.dot_dimension_numbers<[1], [0], [0], [1], [0, 0, 1, 1], [], []>} : vector<8x36xf32>, vector<36x256xf32>, vector<8x256xf32> -> vector<8x256xf32>
    %c0_34 = arith.constant 0 : index
    %c0_35 = arith.constant 0 : index
    %63 = vector.load %arg5[%c0_34, %c0_35] : memref<8x1xf32, #tpu.memory_space<vmem>>, vector<8x1xf32>
    %64 = vector.broadcast %63 : vector<8x1xf32> to vector<8x256xf32>
    %65 = arith.addf %62, %64 : vector<8x256xf32>
    %66 = arith.negf %65 : vector<8x256xf32>
    %67 = math.exp %66 : vector<8x256xf32>
    %cst_36 = arith.constant 1.000000e+00 : f32
    %68 = vector.broadcast %cst_36 : f32 to vector<8x256xf32>
    %69 = arith.addf %68, %67 : vector<8x256xf32>
    %70 = arith.divf %68, %69 : vector<8x256xf32>
    %71 = arith.mulf %65, %70 : vector<8x256xf32>
    %72 = arith.addf %71, %1 : vector<8x256xf32>
    %c0_37 = arith.constant 0 : index
    %c0_38 = arith.constant 0 : index
    %c0_39 = arith.constant 0 : index
    %73 = vector.load %arg8[%c0_37, %c0_38, %c0_39] : memref<1x8x256xf32, #tpu.memory_space<vmem>>, vector<1x8x256xf32>
    %74 = vector.shape_cast %73 : vector<1x8x256xf32> to vector<8x256xf32>
    %75 = vector.shape_cast %72 : vector<8x256xf32> to vector<1x8x256xf32>
    tpu.vector_store %arg8[%c0_37, %c0_38, %c0_39], %75 {strides = array<i32>} : memref<1x8x256xf32, #tpu.memory_space<vmem>>, vector<1x8x256xf32>,
    return
  }
  func.func @transform_0(%arg0: i32) -> (i32, i32, i32) {
    %c0_i32 = arith.constant 0 : i32
    %c0_i32_0 = arith.constant 0 : i32
    %c0_i32_1 = arith.constant 0 : i32
    return %arg0, %c0_i32, %c0_i32_0 : i32, i32, i32
  }
  func.func @transform_1(%arg0: i32) -> (i32, i32) {
    %c0_i32 = arith.constant 0 : i32
    %c0_i32_0 = arith.constant 0 : i32
    %c0_i32_1 = arith.constant 0 : i32
    return %c0_i32, %c0_i32_0 : i32, i32
  }
  func.func @transform_2(%arg0: i32) -> (i32, i32) {
    %c0_i32 = arith.constant 0 : i32
    %c0_i32_0 = arith.constant 0 : i32
    %c0_i32_1 = arith.constant 0 : i32
    return %c0_i32, %c0_i32_0 : i32, i32
  }
  func.func @transform_3(%arg0: i32) -> (i32, i32) {
    %c0_i32 = arith.constant 0 : i32
    %c0_i32_0 = arith.constant 0 : i32
    %c0_i32_1 = arith.constant 0 : i32
    return %c0_i32, %c0_i32_0 : i32, i32
  }
  func.func @transform_4(%arg0: i32) -> (i32, i32) {
    %c0_i32 = arith.constant 0 : i32
    %c0_i32_0 = arith.constant 0 : i32
    %c0_i32_1 = arith.constant 0 : i32
    return %c0_i32, %c0_i32_0 : i32, i32
  }
  func.func @transform_5(%arg0: i32) -> (i32, i32) {
    %c0_i32 = arith.constant 0 : i32
    %c0_i32_0 = arith.constant 0 : i32
    %c0_i32_1 = arith.constant 0 : i32
    return %c0_i32, %c0_i32_0 : i32, i32
  }
  func.func @transform_6(%arg0: i32) -> (i32, i32) {
    %c0_i32 = arith.constant 0 : i32
    %c0_i32_0 = arith.constant 0 : i32
    %c0_i32_1 = arith.constant 0 : i32
    return %c0_i32, %c0_i32_0 : i32, i32
  }
  func.func @transform_7(%arg0: i32) -> (i32, i32, i32) {
    %c0_i32 = arith.constant 0 : i32
    %c0_i32_0 = arith.constant 0 : i32
    %c0_i32_1 = arith.constant 0 : i32
    return %arg0, %c0_i32, %c0_i32_0 : i32, i32, i32
  }
}

</mosaic_0001>

<bundles_post_ra>
// kernel: tpu_custom_call.1
= control target key start
LH: loop header
LB: loop body
LE: loop exit
PB: predicated region body
PF: predicated region fallthrough
CT: control target
= control target key end

     0   :  { %12 = vsyncpa [#allocation4], 0  ;;  %s1169_s0 = inlined_call_operand.hbm [shape: f32[2,8,256], index: 0, kind: input, shape index: {}]   ;;  %s1170_s1 = inlined_call_operand.vmem [shape: f32[4,8], index: 1, kind: input, shape index: {}]   ;;  %s1171_s2 = inlined_call_operand.vmem [shape: f32[4,1], index: 2, kind: input, shape index: {}]   ;;  %s1172_s3 = inlined_call_operand.vmem [shape: f32[8,36], index: 3, kind: input, shape index: {}]   ;;  %s1173_s4 = inlined_call_operand.vmem [shape: f32[8,1], index: 4, kind: input, shape index: {}]   ;;  %s1174_s5 = inlined_call_operand.vmem [shape: f32[1,256], index: 5, kind: input, shape index: {}]   ;;  %s1175_s6 = inlined_call_operand.vmem [shape: f32[1,256], index: 6, kind: input, shape index: {}]   ;;  %s1176_s7 = inlined_call_operand.hbm [shape: f32[2,8,256], index: 7, kind: output, shape index: {}]  }
   0x1   :  { %14 = vsyncpa [#allocation4 + $0x1], 0 }
   0x2   :  { %15 = vsyncpa [#allocation5], 0 }
   0x3   :  { %17 = vsyncpa [#allocation5 + $0x1], 0  ;;  %s987_s24 = smov 0   ;;  %s989_s25 = smov 0  }
   0x4   :  { %s991_s26 = smov 0   ;;  %s993_s27 = smov 0  }
   0x5 LB: > { %s1008_s28 = sadd.s32 4294967295, %s933_s27   ;;  %s743_s29 = sadd.s32 4294967294, %s933_s27   ;;  %s933_s27 = sphi %s993_s27, %s1193_s27   ;;  %s929_s26 = sphi %s991_s26, %s1192_s26   ;;  %s925_s25 = sphi %s989_s25, %s1191_s25   ;;  %s921_s24 = sphi %s987_s24, %s1190_s24  }
   0x6   : > { %s1012_s30 = sadd.s32 1, %s933_s27   ;;  %s30_s8 = sadd.s32 1, %s929_s26 }
   0x7   : > { %s27_s9 = ssub.s32 %s933_s27, %s1012_s30  ;;  %p37_p0 = scmp.ne.s32.totalorder %s929_s26, %s925_s25 }
   0x8   : > { %p28_p1 = scmp.eq.s32.totalorder %s27_s9, 0  ;;  %p38_p2 = scmp.eq.s32.totalorder %s933_s27, 0 }
   0x9   : > { %p43_p3 = scmp.ne.s32.totalorder %s925_s25, %s921_s24  ;;  %p44_p4 = scmp.eq.s32.totalorder %s1008_s28, 0 }
   0xa   : > { %s1024_s10 = scalar_select %p28_p1, %s929_s26, %s30_s8  }
   0xb   : > { %p1026_p5 = por %p38_p2, %p37_p0  ;;  %p1030_p6 = por %p44_p4, %p43_p3 }
   0xc   : > { %p193_p7 = scmp.eq.s32.totalorder %s1008_s28, 1  ;;  %p199_p8 = scmp.eq.s32.totalorder %s743_s29, 1 }
   0xd   : > { %s1180_s12 = scalar_select %p1030_p6, 1, 0 }
   0xe   : > { %p779_p10 = scmp.lt.s32.totalorder %s933_s27, 2  ;;  %p1037_p11 = por %p193_p7, %p37_p0 }
   0xf   : > { %p1041_p12 = por %p199_p8, %p43_p3  ;;  %s237_s15 = sand.u32 1, %s929_s26  }
  0x10   : > { %s1181_s13 = scalar_select %p1037_p11, 1, 0 }
  0x11   : > { %s1182_s14 = scalar_select %p1041_p12, 1, 0 }
  0x12   : > { %s765_s16 = sshll.u32 %s933_s27, 8  ;;  %s746_s17 = sshll.u32 %s237_s15, 4 }
  0x13   : > { %s1050_s20 = scalar_lea.hbm %s1169_s0, %s765_s16  ;;  %s241_s21 = scalar_lea.vmem [#allocation3], %s746_s17 }
  0x14   : > { %s249_s22 = sshll.u32 %s241_s21, 4  ;;  %p1054_p13 = pnand %p779_p10, %p1026_p5  ;;  %s1058_s22 = int_to_ptr.vmem [resolvable:$true] %s249_s22 }
  0x15   : > { %s238_s29 = scalar_lea.sflag [#allocation4], %s237_s15  ;;  %s841_s8 = scalar_lea.hbm %s1050_s20, 256 }
  0x16   : > { %p842_p2 = scmp.ne.s32.totalorder %s1050_s20, %s841_s8  ;;  %p843_p3 = pneg %p1054_p13 }
  0x17   : > { %s846_s11 = scalar_lea.hbm %s1169_s0, 512  ;;  %p847_p5 = scmp.lt.s32.totalorder %s1050_s20, %s1169_s0 }
  0x18   : > { %p844_p4 = pnand %p843_p3, %p842_p2  ;;  %p848_p8 = scmp.lt.s32.totalorder %s846_s11, %s841_s8 }
  0x1a   : > { %p845_p7 = pneg %p844_p4  ;;  %p849_p10 = por %p848_p8, %p847_p5 }
  0x1c   : > { %p850_p9 = pnand %p849_p10, %p845_p7 }
  0x1e   : > { %853 = shalt.err (!%p850_p9)
}
  0x1f   : > { %s854_s15 = scalar_lea.vmem %s1058_s22, 256  ;;  %s935_s19 = smov [#allocation3]  }
  0x20   : > { %p855_p0 = scmp.ne.s32.totalorder %s1058_s22, %s854_s15  ;;  %s859_s21 = sshll.u32 %s935_s19, 4  ;;  %s860_s21 = int_to_ptr.vmem [resolvable:$false] %s859_s21 }
  0x21   : > { %s861_s9 = scalar_lea.vmem %s860_s21, 512  ;;  %p862_p4 = scmp.lt.s32.totalorder %s1058_s22, %s860_s21 }
  0x22   : > { %p857_p1 = pnand %p855_p0, %p843_p3  ;;  %p863_p12 = scmp.lt.s32.totalorder %s861_s9, %s854_s15 }
  0x24   : > { %p858_p2 = pneg %p857_p1  ;;  %p864_p11 = por %p863_p12, %p862_p4 }
  0x26   : > { %p865_p6 = pnand %p864_p11, %p858_p2 }
  0x28   : > { %868 = shalt.err (!%p865_p6)
}
  0x29   : > { %774 = dma.hbm_to_vmem [thread:$0]  (!%p1054_p13), %s1050_s20, 256, %s1058_s22, %s238_s29  }
  0x2a   : > { %p1184_p9 = scmp.lt.s32.totalorder %s933_s27, 3  ;;  %p1185_p7 = scmp.ge.s32.totalorder %s933_s27, 1 }
  0x2c   : > { %p255_p0 = pnand %p1185_p7, %p1184_p9 }
  0x2d   : > { %s1085_s8 = sand.u32 (!%p255_p0), 1, %s925_s25   ;;  %p1186_p6 = scmp.ne.s32.totalorder (!%p255_p0), %s1180_s12, 0 }
  0x2e   : > { %258 = sbr.rel (%p255_p0) target bundleno = 688 (0x2b0), region = 48  ;;  %s750_s16 = sshll.u32 (!%p255_p0), %s1085_s8, 4 }
  0x2f   : > { %s261_s11 = scalar_lea.sflag (!%p255_p0), [#allocation4], %s1085_s8  ;;  %s264_s23 = scalar_lea.vmem (!%p255_p0), [#allocation3], %s750_s16 }
  0x33   : > { %912 = dma.done.wait (%p1186_p6), %s261_s11, 256  }
  0x34   : > { %914 = vsyncadd (%p1186_p6), %s261_s11, 4294967040  ;;  %v936_v0 = vmov 0.0   ;;  %v937_v1 = vmov 0   ;;  %v1095_v2 = vld [vmem:[%s264_s23 + $0x8] sm:$0xff]  ;;  %v1097_v3 = vld [vmem:[%s264_s23] sm:$0xff]  ;;  %vm304_vm0 = vcmask 64512   ;;  %v407_v22 = vlaneseq }
  0x35   : > { %372 = vmatprep.mubr.f32.mxu0 %v936_v0  ;;  %823 = vset.pattern.permute.xlu0 %v937_v1  ;;  %v297_v4 = vld [vmem:[%s1170_s1] sm:$0xf]  ;;  %s938_s17 = smov 127   ;;  %s939_s18 = smov 111   ;;  %vm532_vm1 = vcmask 908288   ;;  %vm464_vm2 = vcmask 7168  }
  0x36   : > { %633 = vmatprep.mubr.f32.mxu1 %v936_v0  ;;  %824 = vset.pattern.permute.xlu1 %v937_v1  ;;  %v298_v5 = vld [vmem:[%s1171_s2] sm:$0xf]  ;;  %s940_s15 = smov 112   ;;  %s941_s19 = smov 113   ;;  %v408_v23 = vshrl.u32 %v407_v22, 7  ;;  %vm504_vm3 = vcmask 924672  }
  0x37   : > { %338 = vmatprep.subr.mxu0 %v1095_v2  ;;  %301 = vperm.xlu0 %823, %v298_v5   ;;  %s942_s21 = smov 1   ;;  %s943_s9 = smov 15   ;;  %v552_v21 = vld [vmem:[%s1173_s4] sm:$0xff]  ;;  %vm440_vm4 = vcmask 121856   ;;  %vm485_vm5 = vcmask 1039360   ;;  %vm562_vm6 = vcmask 1043456  }
  0x38   : > { %339 = vmatpush1.msra.mxu0 %v1097_v3  ;;  %s944_s11 = smov 17   ;;  %s945_s23 = smov 16   ;;  %v409_v26 = vsub.s32 0, %v408_v23  ;;  %v413_v27 = vsub.s32 1, %v408_v23  ;;  %v394_v28 = vld [vmem:[%s1175_s6] sm:$0x3] }
  0x39   : > { %752 = vmatmul.mubr.msk.f32.vlgmr.msra.gmra.mxu0 %vm304_vm0, %v297_v4  ;;  %v393_v29 = vld [vmem:[%s1174_s5] sm:$0x3]  ;;  %vm517_vm7 = vcmask 916480   ;;  %vm401_vm8 = vcmask 138240   ;;  %vm425_vm9 = vcmask 130048   ;;  %vm558_vm10 = vcmask 293888  }
  0x3a   : > { %v449_v32 = vrot.slane %v394_v28, %v409_v26  ;;  %v453_v33 = vrot.slane %v394_v28, %v413_v27  ;;  %v1116_v34 = vrot.slane %v393_v29, %v409_v26  ;;  %v414_v37 = vrot.slane %v393_v29, %v413_v27  ;;  %s659_s29 = scalar_lea.sflag [#allocation5], %s1085_s8  ;;  %p1187_p12 = scmp.ne.s32.totalorder %s1181_s13, 0 }
  0xb2   : > { %v302_v6 = vpop.permute.xlu0 %301 }
  0xf9   : > { %v374_v7 = vpop.f32.mrf.mxu0 }
  0xfa   : > { %v375_v8 = vadd.f32 %v374_v7, %v302_v6 }
  0xfb   : > { %v376_v9 = vpop.f32.mrf.mxu0 }
  0xfc   : > { %v753_v10 = vmul.f32 -1.442695, %v375_v8  ;;  %v377_v11 = vadd.f32 %v376_v9, %v302_v6 }
  0xfe   : > { %825 = vpow2.f32 %v753_v10  ;;  %v754_v12 = vmul.f32 -1.442695, %v377_v11 }
 0x100   : > { %827 = vpow2.f32 %v754_v12 }
 0x10b   : > { %v826_v13 = vpop.eup %825 }
 0x10c   : > { %v385_v14 = vadd.f32 1.0, %v826_v13 }
 0x10d   : > { %v828_v15 = vpop.eup %827 }
 0x10e   : > { %829 = vrcp.f32 %v385_v14  ;;  %v386_v16 = vadd.f32 1.0, %v828_v15 }
 0x110   : > { %831 = vrcp.f32 %v386_v16 }
 0x11b   : > { %v830_v17 = vpop.eup %829 }
 0x11c   : > { %v391_v18 = vmul.f32 %v830_v17, %v375_v8 }
 0x11d   : > { %v832_v19 = vpop.eup %831 }
 0x11e   : > { %479 = vst [vmem:[#allocation2 + $0x48] sm:$0xf] %v391_v18  ;;  %v392_v20 = vmul.f32 %v832_v19, %v377_v11  ;;  %481 = vrot.lane.b32.xlu0 %v391_v18, %s938_s17  ;;  %528 = vrot.lane.b32.xlu1 %v391_v18, %s939_s18 }
 0x120   : > { %480 = vst [vmem:[#allocation2 + $0x28] sm:$0xf] %v392_v20 }
 0x122   : > { %513 = vrot.lane.b32.xlu0 %v391_v18, %s940_s15  ;;  %500 = vrot.lane.b32.xlu1 %v391_v18, %s941_s19 }
 0x126   : > { %530 = vrot.lane.b32.xlu0 %v392_v20, %s939_s18  ;;  %460 = vrot.lane.b32.xlu1 %v391_v18, %s942_s21 }
 0x12a   : > { %502 = vrot.lane.b32.xlu0 %v392_v20, %s941_s19  ;;  %436 = vrot.lane.b32.xlu1 %v391_v18, %s943_s9 }
 0x12e   : > { %462 = vrot.lane.b32.xlu0 %v392_v20, %s942_s21  ;;  %483 = vrot.lane.b32.xlu1 %v392_v20, %s938_s17  ;;  %s766_s21 = sshll.u32 %s1008_s28, 8  ;;  %s946_s28 = smov [#allocation6]  }
 0x12f   : > { %s671_s22 = scalar_lea.hbm %s1176_s7, %s766_s21 }
 0x132   : > { %438 = vrot.lane.b32.xlu0 %v392_v20, %s943_s9  ;;  %515 = vrot.lane.b32.xlu1 %v392_v20, %s940_s15  ;;  %s294_s9 = scalar_lea.vmem [#allocation6], %s750_s16  ;;  %s873_s16 = sshll.u32 %s946_s28, 4  ;;  %s874_s16 = int_to_ptr.vmem [resolvable:$false] %s873_s16 }
 0x133   : > { %s875_s17 = scalar_lea.vmem %s874_s16, 512 }
 0x136   : > { %399 = vrot.lane.b32.xlu0 %v392_v20, %s944_s11  ;;  %397 = vrot.lane.b32.xlu1 %v391_v18, %s944_s11  ;;  %s673_s11 = sshll.u32 %s294_s9, 4  ;;  %s674_s11 = int_to_ptr.vmem [resolvable:$true] %s673_s11 }
 0x137   : > { %s869_s12 = scalar_lea.vmem %s674_s11, 256  ;;  %p876_p3 = scmp.lt.s32.totalorder %s674_s11, %s874_s16 }
 0x138   : > { %p870_p11 = scmp.ne.s32.totalorder %s674_s11, %s869_s12  ;;  %p877_p5 = scmp.lt.s32.totalorder %s875_s17, %s869_s12 }
 0x13a   : > { %423 = vrot.lane.b32.xlu0 %v392_v20, %s945_s23  ;;  %421 = vrot.lane.b32.xlu1 %v391_v18, %s945_s23  ;;  %p871_p13 = pnand %p870_p11, %p1187_p12  ;;  %p878_p8 = por %p877_p5, %p876_p3 }
 0x13c   : > { %p872_p1 = pneg %p871_p13 }
 0x13e   : > { %555 = vperm.xlu1 %824, %v552_v21   ;;  %p879_p10 = pnand %p878_p8, %p872_p1 }
 0x190   : > { %v482_v24 = vpop.permute.xlu0 %481  ;;  %v529_v25 = vpop.permute.xlu1 %528 }
 0x194   : > { %v514_v30 = vpop.permute.xlu0 %513  ;;  %v501_v31 = vpop.permute.xlu1 %500 }
 0x198   : > { %v531_v35 = vpop.permute.xlu0 %530  ;;  %v461_v36 = vpop.permute.xlu1 %460 }
 0x199   : > { %v533_v38 = vsel %vm532_vm1, %v529_v25, %v531_v35  ;;  %v536_v39 = vsel %vm532_vm1, %v531_v35, 0.0  ;;  %v468_v40 = vsel %vm464_vm2, 0.0, %v461_v36 }
 0x19a   : > { %v537_v41 = vmul.f32 %v533_v38, %v449_v32  ;;  %v538_v42 = vmul.f32 %v536_v39, %v453_v33  ;;  %v469_v43 = vmul.f32 %v468_v40, %v1116_v34 }
 0x19c   : > { %539 = vst [vmem:[#allocation2 + $0x40] sm:$0xf] %v537_v41  ;;  %540 = vst [vmem:[#allocation2 + $0x38] sm:$0xf] %v538_v42  ;;  %v473_v44 = vrot.slane %v469_v43, 4  ;;  %v503_v45 = vpop.permute.xlu0 %502  ;;  %v437_v46 = vpop.permute.xlu1 %436 }
 0x19d   : > { %v505_v47 = vsel %vm504_vm3, %v501_v31, %v503_v45  ;;  %v508_v48 = vsel %vm504_vm3, %v503_v45, 0.0  ;;  %v444_v49 = vsel %vm440_vm4, 0.0, %v437_v46 }
 0x19e   : > { %477 = vst [vmem:[#allocation2 + $0x18] sm:$0xf0] %v473_v44  ;;  %v509_v50 = vmul.f32 %v505_v47, %v1116_v34  ;;  %v510_v51 = vmul.f32 %v508_v48, %v414_v37  ;;  %v456_v52 = vmul.f32 %v449_v32, %v444_v49 }
 0x1a0   : > { %511 = vst [vmem:[#allocation2 + $0x8] sm:$0xf] %v509_v50  ;;  %512 = vst [vmem:[#allocation2 + $0x20] sm:$0xf] %v510_v51  ;;  %v463_v53 = vpop.permute.xlu0 %462  ;;  %v484_v54 = vpop.permute.xlu1 %483 }
 0x1a1   : > { %458 = vst [vmem:[#allocation2 + $0x18] sm:$0xf] %v456_v52  ;;  %v465_v55 = vsel %vm464_vm2, %v461_v36, %v463_v53  ;;  %v486_v56 = vsel %vm485_vm5, %v482_v24, %v484_v54  ;;  %v489_v57 = vsel %vm485_vm5, %v484_v54, 0.0 }
 0x1a2   : > { %v470_v58 = vmul.f32 %v465_v55, %v414_v37  ;;  %v490_v59 = vmul.f32 %v486_v56, %v449_v32  ;;  %v491_v60 = vmul.f32 %v489_v57, %v453_v33  ;;  %v541_v32 = vld [vmem:[%s1172_s3] sm:$0xff] }
 0x1a3   : > { %v551_v61 = vld [vmem:[#allocation2 + $0x38] sm:$0xf]  ;;  %v550_v62 = vld [vmem:[#allocation2 + $0x40] sm:$0xf] }
 0x1a4   : > { %v474_v63 = vrot.slane %v470_v58, 4  ;;  %v494_v0 = vrot.slane %v490_v59, 4  ;;  %v495_v1 = vrot.slane %v491_v60, 4  ;;  %755 = vmatprep.subr.msk.mxu1 %vm562_vm6, %v551_v61  ;;  %v439_v4 = vpop.permute.xlu0 %438  ;;  %v516_v5 = vpop.permute.xlu1 %515 }
 0x1a5   : > { %v441_v6 = vsel %vm440_vm4, %v437_v46, %v439_v4  ;;  %v518_v7 = vsel %vm517_vm7, %v514_v30, %v516_v5  ;;  %v520_v8 = vsel %vm517_vm7, %v516_v5, 0.0  ;;  %756 = vmatpush1.msk.msra.mxu1 %vm562_vm6, %v550_v62 }
 0x1a6   : > { %478 = vst [vmem:[#allocation2 + $0x10] sm:$0xf0] %v474_v63  ;;  %498 = vst [vmem:[#allocation2 + $0x48] sm:$0xf0] %v494_v0  ;;  %v457_v9 = vmul.f32 %v453_v33, %v441_v6  ;;  %v522_v10 = vrot.slane %v518_v7, 4  ;;  %v523_v11 = vrot.slane %v520_v8, 4 }
 0x1a7   : > { %499 = vst [vmem:[#allocation2 + $0x28] sm:$0xf0] %v495_v1 }
 0x1a8   : > { %459 = vst [vmem:[#allocation2 + $0x10] sm:$0xf] %v457_v9  ;;  %526 = vst [vmem:[#allocation2 + $0x8] sm:$0xf0] %v522_v10  ;;  %v400_v12 = vpop.permute.xlu0 %399  ;;  %v398_v13 = vpop.permute.xlu1 %397  ;;  %v544_v29 = vld [vmem:[#allocation2 + $0x18] sm:$0xff] }
 0x1a9   : > { %527 = vst [vmem:[#allocation2 + $0x20] sm:$0xf0] %v523_v11  ;;  %v402_v14 = vsel %vm401_vm8, %v398_v13, %v400_v12  ;;  %v405_v15 = vsel %vm401_vm8, 0.0, %v398_v13 }
 0x1aa   : > { %v417_v16 = vmul.f32 %v1116_v34, %v405_v15  ;;  %v418_v17 = vmul.f32 %v414_v37, %v402_v14 }
 0x1ac   : > { %419 = vst [vmem:[#allocation2 + $0x30] sm:$0xf] %v417_v16  ;;  %420 = vst [vmem:[#allocation2] sm:$0xf] %v418_v17  ;;  %v424_v18 = vpop.permute.xlu0 %423  ;;  %v422_v19 = vpop.permute.xlu1 %421 }
 0x1ad   : > { %v426_v20 = vsel %vm425_vm9, %v422_v19, %v424_v18  ;;  %v428_v21 = vsel %vm425_vm9, 0.0, %v422_v19  ;;  %v546_v27 = vld [vmem:[#allocation2 + $0x48] sm:$0xff] }
 0x1ae   : > { %v430_v22 = vrot.slane %v428_v21, 4  ;;  %v431_v23 = vrot.slane %v426_v20, 4  ;;  %v547_v26 = vld [vmem:[#allocation2 + $0x28] sm:$0xff] }
 0x1af   : > { %v548_v25 = vld [vmem:[#allocation2 + $0x8] sm:$0xff]  ;;  %v545_v28 = vld [vmem:[#allocation2 + $0x10] sm:$0xff] }
 0x1b0   : > { %v549_v24 = vld [vmem:[#allocation2 + $0x20] sm:$0xff]  ;;  %434 = vst [vmem:[#allocation2 + $0x30] sm:$0xf0] %v430_v22  ;;  %435 = vst [vmem:[#allocation2] sm:$0xf0] %v431_v23 }
 0x1b1   : > { %593 = vmatprep.subr.mxu1 %v549_v24 }
 0x1b2   : > { %594 = vmatpush1.msra.mxu1 %v548_v25 }
 0x1b3   : > { %595 = vmatprep.subr.mxu1 %v547_v26 }
 0x1b4   : > { %596 = vmatpush1.msra.mxu1 %v546_v27 }
 0x1b5   : > { %597 = vmatprep.subr.mxu1 %v545_v28 }
 0x1b6   : > { %598 = vmatpush1.msra.mxu1 %v544_v29 }
 0x1b7   : > { %v543_v30 = vld [vmem:[#allocation2] sm:$0xff]  ;;  %v542_v31 = vld [vmem:[#allocation2 + $0x30] sm:$0xff] }
 0x1b8   : > { %599 = vmatprep.subr.mxu1 %v543_v30 }
 0x1b9   : > { %600 = vmatpush1.msra.mxu1 %v542_v31  ;;  %v556_v33 = vpop.permute.xlu1 %555 }
 0x1ba   : > { %757 = vmatmul.mubr.msk.f32.vlgmr.msra.gmra.mxu1 %vm558_vm10, %v541_v32 }
 0x27a   : > { %v635_v34 = vpop.f32.mrf.mxu1 }
 0x27b   : > { %v636_v35 = vadd.f32 %v635_v34, %v556_v33 }
 0x27c   : > { %v637_v36 = vpop.f32.mrf.mxu1 }
 0x27d   : > { %v758_v37 = vmul.f32 -1.442695, %v636_v35  ;;  %v638_v38 = vadd.f32 %v637_v36, %v556_v33 }
 0x27f   : > { %833 = vpow2.f32 %v758_v37  ;;  %v759_v39 = vmul.f32 -1.442695, %v638_v38 }
 0x281   : > { %835 = vpow2.f32 %v759_v39 }
 0x28c   : > { %v834_v40 = vpop.eup %833 }
 0x28d   : > { %v646_v41 = vadd.f32 1.0, %v834_v40 }
 0x28e   : > { %v836_v42 = vpop.eup %835 }
 0x28f   : > { %837 = vrcp.f32 %v646_v41  ;;  %v647_v43 = vadd.f32 1.0, %v836_v42 }
 0x291   : > { %839 = vrcp.f32 %v647_v43 }
 0x29c   : > { %v838_v44 = vpop.eup %837 }
 0x29d   : > { %v652_v45 = vmul.f32 %v838_v44, %v636_v35 }
 0x29e   : > { %v840_v46 = vpop.eup %839 }
 0x29f   : > { %v654_v47 = vadd.f32 %v652_v45, %v1097_v3  ;;  %v653_v48 = vmul.f32 %v840_v46, %v638_v38 }
 0x2a1   : > { %v655_v49 = vadd.f32 %v653_v48, %v1095_v2  ;;  %656 = vst [vmem:[%s294_s9] sm:$0xff] %v654_v47 }
 0x2a3   : > { %657 = vst [vmem:[%s294_s9 + $0x8] sm:$0xff] %v655_v49 }
 0x2a4   : > { %882 = shalt.err (!%p879_p10)
}
 0x2a5   : > { %s883_s18 = scalar_lea.hbm %s671_s22, 256  ;;  %s887_s19 = scalar_lea.hbm %s1176_s7, 512 }
 0x2a6   : > { %p884_p2 = scmp.ne.s32.totalorder %s671_s22, %s883_s18  ;;  %p888_p7 = scmp.lt.s32.totalorder %s671_s22, %s1176_s7 }
 0x2a7   : > { %p889_p0 = scmp.lt.s32.totalorder %s887_s19, %s883_s18 }
 0x2a8   : > { %p885_p4 = pnand %p884_p2, %p1187_p12 }
 0x2a9   : > { %p890_p6 = por %p889_p0, %p888_p7 }
 0x2aa   : > { %p886_p9 = pneg %p885_p4 }
 0x2ac   : > { %p891_p11 = pnand %p890_p6, %p886_p9 }
 0x2ae   : > { %894 = shalt.err (!%p891_p11)
}
 0x2af   : > { %769 = dma.vmem_to_hbm [thread:$0]  (%p1187_p12), %s674_s11, 256, %s671_s22, %s659_s29  }
 0x2b0 PF: > { %s685_s23 = sand.u32 1, %s921_s24   ;;  %p1188_p13 = scmp.ne.s32.totalorder %s1182_s14, 0 }
 0x2b1   : > { %p1189_p1 = scmp.ge.s32.totalorder %s933_s27, 2  ;;  %s686_s20 = scalar_lea.sflag [#allocation5], %s685_s23 }
 0x2b3   : > { %p776_p3 = pnand %p1189_p1, %p1188_p13 }
 0x2b5   : > { %p777_p5 = pneg %p776_p3 }
 0x2b7   : > { %916 = dma.done.wait (%p777_p5), %s686_s20, 256  }
 0x2b8   : > { %918 = vsyncadd (%p777_p5), %s686_s20, 4294967040  ;;  %p20_p8 = scmp.ge.s32.totalorder %s1012_s30, 4   ;;  %s1190_s24 = smov %s925_s25 }
 0x2b9   : > { %s1191_s25 = smov %s929_s26  ;;  %s1192_s26 = smov %s1024_s10 }
 0x2ba   : > { %s1193_s27 = smov %s1012_s30  ;;  %22 = sbr.rel (!%p20_p8) target bundleno = 5 (0x5), region = 93 }
 0x2bf   :  { %691 = vsyncpa [#allocation4], 1 }
 0x2c0   :  { %693 = vsyncpa [#allocation4 + $0x1], 1 }
 0x2c1   :  { %694 = vsyncpa [#allocation5], 1 }
 0x2c2   :  { %696 = vsyncpa [#allocation5 + $0x1], 1 }

</bundles_post_ra>
